<compile_context>
chip_gen: v7x
topology: tpu7x:2x2x1
jax: 0.10.0
libtpu: 0.0.40
codegen_flags: <defaults>
</compile_context>

<pallas_src>
import jax
import jax.numpy as jnp
from jax.experimental import pallas as pl
from jax.experimental.pallas import tpu as pltpu


_FUSED_W = 128            # lane-dense width of the fused x-projection slab
_TILE_B_DEFAULT = 1024    # bigger tiles amortize the ~0.35us/step grid overhead
_VMEM_BUDGET = 48 << 20   # stay well under v7x's 64 MiB physical VMEM


def _round_up(n, m):
    return (n + m - 1) // m * m


def fmac_kernel(x_ref, wa_ref, wb_ref, ba_ref, selv_ref, selfm_ref,
                piW_ref, w2_ref, out_ref):
    """One batch tile: all x-driven projections in one lane-dense MXU pass."""
    x = x_ref[...]                                             # [TB, F] f32

    # fused[:, 0:k]    = x @ v
    # fused[:, k]      = w0 + x @ w1 - 0.5 * (x*x) @ v2sum
    # fused[:, k+1]    = 1.0   (constant lane -> carries [pi_b | vf_b2] via w2)
    # fused[:, 64:128] = x @ vf_W1 + vf_b1
    fused = (jnp.dot(x, wa_ref[...], preferred_element_type=jnp.float32)
             + jnp.dot(x * x, wb_ref[...], preferred_element_type=jnp.float32)
             + ba_ref[...])                                    # [TB, 128]

    # FM logit = 0.5*sum_j fused[:,j]^2 (v lanes) + fused[:,k], as two MXU
    # projections (0.5 folded into selv host-side; keeps the XLU idle).
    fm_logit = (jnp.dot(fused * fused, selv_ref[...],
                        preferred_element_type=jnp.float32)
                + jnp.dot(fused, selfm_ref[...],
                          preferred_element_type=jnp.float32))  # [TB, 1]
    fm = jax.nn.sigmoid(fm_logit)                              # [TB, 1]

    # ReLU the whole fused slab: lanes outside the value-hidden / constant-1
    # blocks hit zero rows of w2, so this equals ReLU(x@Wv1+bv1) where needed.
    h = jnp.maximum(fused, 0.0)                                # [TB, 128]

    # Actor (VPU outer product on the padded [1,P+V] policy weights) + critic
    # (h @ w2, which also injects [pi_b | vf_b2] through the constant-1 lane),
    # written as a single lane-dense [TB, P+V] slab and split in the wrapper.
    out = fm * piW_ref[...] + jnp.dot(h, w2_ref[...],
                                      preferred_element_type=jnp.float32)
    out_ref[...] = jnp.maximum(out, 0.0)                       # [TB, P+V]


def prepare_fused_params(params):
    """Fold FM + policy + value weights into lane-dense fused operands.

    Call ONCE per parameter set (hoisted out of the per-forward path)."""
    f32 = jnp.float32
    w1 = params["w1"].astype(f32)                 # [F, 1]
    v = params["v"].astype(f32)                   # [F, k]
    vf_W1 = params["vf_W1"].astype(f32)           # [F, H]
    vf_W2 = params["vf_W2"].astype(f32)           # [H, V]
    F, k = v.shape
    H = vf_W1.shape[1]
    P = params["pi_W"].shape[1]
    V = vf_W2.shape[1]
    h_off = _FUSED_W - H                          # hidden block start (64 for H=64)
    assert H <= _FUSED_W and k + 2 <= h_off, "fused 128-lane layout overflow"

    v2sum = jnp.sum(v * v, axis=1, keepdims=True)              # [F, 1]

    wa = jnp.zeros((F, _FUSED_W), f32)
    wa = wa.at[:, :k].set(v)
    wa = wa.at[:, k:k + 1].set(w1)
    wa = wa.at[:, h_off:h_off + H].set(vf_W1)

    wb = jnp.zeros((F, _FUSED_W), f32)
    wb = wb.at[:, k:k + 1].set(-0.5 * v2sum)

    ba = jnp.zeros((1, _FUSED_W), f32)
    ba = ba.at[0, k].set(params["w0"].reshape(()))
    ba = ba.at[0, k + 1].set(1.0)                 # constant-1 lane (bias carrier)
    ba = ba.at[0, h_off:h_off + H].set(params["vf_b1"].reshape(-1))

    # FM-logit projection columns (quadratic pick with 0.5 folded in; linear pick).
    selv = jnp.zeros((_FUSED_W, 1), f32).at[:k, 0].set(0.5)
    selfm = jnp.zeros((_FUSED_W, 1), f32).at[k, 0].set(1.0)

    piW = jnp.zeros((1, P + V), f32).at[0, :P].set(params["pi_W"].reshape(-1))

    w2 = jnp.zeros((_FUSED_W, P + V), f32)
    w2 = w2.at[h_off:h_off + H, P:P + V].set(vf_W2)
    bias_row = jnp.concatenate([params["pi_b"].reshape(-1),
                                params["vf_b2"].reshape(-1)]).astype(f32)
    w2 = w2.at[k + 1, :].set(bias_row)            # ReLU(1)=1 -> adds [pi_b | vf_b2]

    return dict(wa=wa, wb=wb, ba=ba, selv=selv, selfm=selfm,
                piW=piW, w2=w2, P=P, V=V, F=F)


def _vmem_bytes(tb, F, PV):
    resident = 4 * (2 * F * _FUSED_W        # wa, wb
                    + _FUSED_W              # ba
                    + 2 * _FUSED_W          # selv, selfm
                    + PV                    # piW
                    + _FUSED_W * PV)        # w2
    streamed = 4 * tb * (F + PV)            # x tile + out tile
    return 2 * streamed + 2 * resident      # double-buffered pipelining


def fmac_forward(x, fp, *, tile_b=_TILE_B_DEFAULT):
    """x: [B, F]; fp: output of prepare_fused_params (pre-folded, cached)."""
    P, V, F = fp["P"], fp["V"], fp["F"]
    PV = P + V
    B = x.shape[0]
    assert x.shape[1] == F

    # Batch tile: multiple of 8 sublanes. Whenever B allows, take >=2 grid
    # steps so v7x's two TensorCores both get work; then shrink the tile until
    # the pipelined footprint fits the VMEM budget (v7x: 64 MiB physical).
    if B <= 2 * tile_b:
        tb = _round_up(max(pl.cdiv(B, 2), 1), 8)
    else:
        tb = _round_up(tile_b, 8)
    while tb > 8 and _vmem_bytes(tb, F, PV) > _VMEM_BUDGET:
        tb = _round_up(tb // 2, 8)

    # Ragged last block: no jnp.pad of x, OOB output writes are dropped
    # (rows are independent — keep it that way).
    grid = (pl.cdiv(B, tb),)

    x_spec = pl.BlockSpec((tb, F), lambda i: (i, 0))
    out_spec = pl.BlockSpec((tb, PV), lambda i: (i, 0))

    def resident(shape):
        # Full-array block, constant index_map -> stays in VMEM across the grid.
        return pl.BlockSpec(shape, lambda i: (0, 0))

    flops = (2 * B * F * _FUSED_W * 2          # two x-driven matmuls
             + 4 * B * _FUSED_W                # two FM-logit projections
             + 2 * B * _FUSED_W * PV)          # h @ w2
    bytes_accessed = 4 * (B * F + B * PV + 2 * F * _FUSED_W
                          + _FUSED_W * PV + 3 * _FUSED_W + PV)
    vmem_limit = int(min(100 << 20,
                         max(_vmem_bytes(tb, F, PV) + (4 << 20), 16 << 20)))

    out = pl.pallas_call(
        fmac_kernel,
        out_shape=jax.ShapeDtypeStruct((B, PV), jnp.float32),
        grid=grid,
        in_specs=[x_spec,
                  resident((F, _FUSED_W)),        # wa
                  resident((F, _FUSED_W)),        # wb
                  resident((1, _FUSED_W)),        # ba (w0, const-1, vf_b1 folded)
                  resident((_FUSED_W, 1)),        # selv (0.5 on v lanes)
                  resident((_FUSED_W, 1)),        # selfm (1.0 on the FM lane)
                  resident((1, PV)),              # piW (zero-padded to P+V)
                  resident((_FUSED_W, PV))],      # w2 (vf_W2 + bias row, padded)
        out_specs=out_spec,
        compiler_params=pltpu.CompilerParams(
            dimension_semantics=("parallel",),    # v7x: 2 TCs split the batch
            vmem_limit_bytes=vmem_limit),
        cost_estimate=pl.CostEstimate(flops=flops,
                                      transcendentals=B,
                                      bytes_accessed=bytes_accessed),
    )(x, fp["wa"], fp["wb"], fp["ba"], fp["selv"], fp["selfm"],
      fp["piW"], fp["w2"])

    return out[:, :P], out[:, P:]


def make_params(key, features_dim, k=10, last_layer_dim_pi=32,
                last_layer_dim_vf=32, hidden_vf=64):
    ks = jax.random.split(key, 8)
    f32 = jnp.float32
    return {
        # FM
        "w0": jnp.zeros((1, 1), f32),
        "w1": 0.01 * jax.random.normal(ks[0], (features_dim, 1), f32),
        "v":  0.01 * jax.random.normal(ks[1], (features_dim, k), f32),
        # policy head Linear(1, P)  (weights stored [in, out])
        "pi_W": 0.1 * jax.random.normal(ks[2], (1, last_layer_dim_pi), f32),
        "pi_b": 0.1 * jax.random.normal(ks[3], (1, last_layer_dim_pi), f32),
        # value net Linear(F, H) -> Linear(H, V)
        "vf_W1": 0.1 * jax.random.normal(ks[4], (features_dim, hidden_vf), f32),
        "vf_b1": 0.1 * jax.random.normal(ks[5], (1, hidden_vf), f32),
        "vf_W2": 0.1 * jax.random.normal(ks[6], (hidden_vf, last_layer_dim_vf), f32),
        "vf_b2": 0.1 * jax.random.normal(ks[7], (1, last_layer_dim_vf), f32),
    }


def fmac_reference(x, p):
    # Plain-JAX reference mirroring the PyTorch module exactly.
    first = x @ p["w1"]
    sq_sum = (x @ p["v"]) ** 2
    sum_sq = (x * x) @ (p["v"] * p["v"])
    second = 0.5 * jnp.sum(sq_sum - sum_sq, axis=1, keepdims=True)
    fm = jax.nn.sigmoid(p["w0"] + first + second)
    actor = jnp.maximum(fm @ p["pi_W"] + p["pi_b"], 0.0)
    h = jnp.maximum(x @ p["vf_W1"] + p["vf_b1"], 0.0)
    critic = jnp.maximum(h @ p["vf_W2"] + p["vf_b2"], 0.0)
    return actor, critic


if __name__ == "__main__":
    B, F = 8, 16
    key = jax.random.PRNGKey(0)
    kx, kp = jax.random.split(key)
    x = jax.random.normal(kx, (B, F), jnp.float32)
    params = make_params(kp, features_dim=F, k=10,
                         last_layer_dim_pi=32, last_layer_dim_vf=32)

    # Fold weights ONCE (hoisted out of the per-call path), then run the kernel.
    fp = prepare_fused_params(params)
    fp = jax.tree_util.tree_map(
        lambda a: jax.block_until_ready(a) if isinstance(a, jax.Array) else a, fp)

    actor, critic = fmac_forward(x, fp)
    jax.block_until_ready((actor, critic))

    ref_actor, ref_critic = fmac_reference(x, params)
    assert actor.shape == ref_actor.shape and critic.shape == ref_critic.shape
    assert jnp.allclose(actor, ref_actor, atol=1e-4, rtol=1e-4)
    assert jnp.allclose(critic, ref_critic, atol=1e-4, rtol=1e-4)
    print("KERNEL_OK")
</pallas_src>

<mosaic_0001>
module attributes {stable_mosaic.version = 11 : i64} {
  func.func @fmac_kernel(%arg0: i32, %arg1: memref<8x16xf32, #tpu.memory_space<vmem>>, %arg2: memref<16x128xf32, #tpu.memory_space<vmem>>, %arg3: memref<16x128xf32, #tpu.memory_space<vmem>>, %arg4: memref<1x128xf32, #tpu.memory_space<vmem>>, %arg5: memref<128x1xf32, #tpu.memory_space<vmem>>, %arg6: memref<128x1xf32, #tpu.memory_space<vmem>>, %arg7: memref<1x64xf32, #tpu.memory_space<vmem>>, %arg8: memref<128x64xf32, #tpu.memory_space<vmem>>, %arg9: memref<8x64xf32, #tpu.memory_space<vmem>>) attributes {dimension_semantics = [#tpu.dimension_semantics<parallel>], iteration_bounds = array<i64: 1>, scalar_prefetch = 0 : i64, scratch_operands = 0 : i64, tpu.core_type = #tpu.core_type<tc>, window_params = [{transform_indices = @transform_0, window_bounds = array<i64: 8, 16>}, {pipeline_mode = #tpu.pipeline_mode<synchronous>, transform_indices = @transform_1, window_bounds = array<i64: 16, 128>}, {pipeline_mode = #tpu.pipeline_mode<synchronous>, transform_indices = @transform_2, window_bounds = array<i64: 16, 128>}, {pipeline_mode = #tpu.pipeline_mode<synchronous>, transform_indices = @transform_3, window_bounds = array<i64: 1, 128>}, {pipeline_mode = #tpu.pipeline_mode<synchronous>, transform_indices = @transform_4, window_bounds = array<i64: 128, 1>}, {pipeline_mode = #tpu.pipeline_mode<synchronous>, transform_indices = @transform_5, window_bounds = array<i64: 128, 1>}, {pipeline_mode = #tpu.pipeline_mode<synchronous>, transform_indices = @transform_6, window_bounds = array<i64: 1, 64>}, {pipeline_mode = #tpu.pipeline_mode<synchronous>, transform_indices = @transform_7, window_bounds = array<i64: 128, 64>}, {transform_indices = @transform_8, window_bounds = array<i64: 8, 64>}]} {
    %c0 = arith.constant 0 : index
    %c0_0 = arith.constant 0 : index
    %0 = vector.load %arg1[%c0, %c0_0] : memref<8x16xf32, #tpu.memory_space<vmem>>, vector<8x16xf32>
    %c0_1 = arith.constant 0 : index
    %c0_2 = arith.constant 0 : index
    %1 = vector.load %arg2[%c0_1, %c0_2] : memref<16x128xf32, #tpu.memory_space<vmem>>, vector<16x128xf32>
    %cst = arith.constant dense<0.000000e+00> : vector<8x128xf32>
    %2 = tpu.matmul %0, %1, %cst {dimension_numbers = #tpu.dot_dimension_numbers<[1], [0], [0], [1], [0, 0, 1, 1], [], []>} : vector<8x16xf32>, vector<16x128xf32>, vector<8x128xf32> -> vector<8x128xf32>
    %3 = arith.mulf %0, %0 : vector<8x16xf32>
    %c0_3 = arith.constant 0 : index
    %c0_4 = arith.constant 0 : index
    %4 = vector.load %arg3[%c0_3, %c0_4] : memref<16x128xf32, #tpu.memory_space<vmem>>, vector<16x128xf32>
    %cst_5 = arith.constant dense<0.000000e+00> : vector<8x128xf32>
    %5 = tpu.matmul %3, %4, %cst_5 {dimension_numbers = #tpu.dot_dimension_numbers<[1], [0], [0], [1], [0, 0, 1, 1], [], []>} : vector<8x16xf32>, vector<16x128xf32>, vector<8x128xf32> -> vector<8x128xf32>
    %6 = arith.addf %2, %5 : vector<8x128xf32>
    %c0_6 = arith.constant 0 : index
    %c0_7 = arith.constant 0 : index
    %7 = vector.load %arg4[%c0_6, %c0_7] : memref<1x128xf32, #tpu.memory_space<vmem>>, vector<1x128xf32>
    %8 = vector.broadcast %7 : vector<1x128xf32> to vector<8x128xf32>
    %9 = arith.addf %6, %8 : vector<8x128xf32>
    %10 = arith.mulf %9, %9 : vector<8x128xf32>
    %c0_8 = arith.constant 0 : index
    %c0_9 = arith.constant 0 : index
    %11 = vector.load %arg5[%c0_8, %c0_9] : memref<128x1xf32, #tpu.memory_space<vmem>>, vector<128x1xf32>
    %cst_10 = arith.constant dense<0.000000e+00> : vector<8x1xf32>
    %12 = tpu.matmul %10, %11, %cst_10 {dimension_numbers = #tpu.dot_dimension_numbers<[1], [0], [0], [1], [0, 0, 1, 1], [], []>} : vector<8x128xf32>, vector<128x1xf32>, vector<8x1xf32> -> vector<8x1xf32>
    %c0_11 = arith.constant 0 : index
    %c0_12 = arith.constant 0 : index
    %13 = vector.load %arg6[%c0_11, %c0_12] : memref<128x1xf32, #tpu.memory_space<vmem>>, vector<128x1xf32>
    %cst_13 = arith.constant dense<0.000000e+00> : vector<8x1xf32>
    %14 = tpu.matmul %9, %13, %cst_13 {dimension_numbers = #tpu.dot_dimension_numbers<[1], [0], [0], [1], [0, 0, 1, 1], [], []>} : vector<8x128xf32>, vector<128x1xf32>, vector<8x1xf32> -> vector<8x1xf32>
    %15 = arith.addf %12, %14 : vector<8x1xf32>
    %16 = arith.negf %15 : vector<8x1xf32>
    %17 = math.exp %16 : vector<8x1xf32>
    %cst_14 = arith.constant 1.000000e+00 : f32
    %18 = vector.broadcast %cst_14 : f32 to vector<8x1xf32>
    %19 = arith.addf %18, %17 : vector<8x1xf32>
    %20 = arith.divf %18, %19 : vector<8x1xf32>
    %cst_15 = arith.constant 0.000000e+00 : f32
    %21 = vector.broadcast %cst_15 : f32 to vector<8x128xf32>
    %22 = arith.maximumf %9, %21 : vector<8x128xf32>
    %c0_16 = arith.constant 0 : index
    %c0_17 = arith.constant 0 : index
    %23 = vector.load %arg7[%c0_16, %c0_17] : memref<1x64xf32, #tpu.memory_space<vmem>>, vector<1x64xf32>
    %24 = vector.broadcast %20 : vector<8x1xf32> to vector<8x64xf32>
    %25 = vector.broadcast %23 : vector<1x64xf32> to vector<8x64xf32>
    %26 = arith.mulf %24, %25 : vector<8x64xf32>
    %c0_18 = arith.constant 0 : index
    %c0_19 = arith.constant 0 : index
    %27 = vector.load %arg8[%c0_18, %c0_19] : memref<128x64xf32, #tpu.memory_space<vmem>>, vector<128x64xf32>
    %cst_20 = arith.constant dense<0.000000e+00> : vector<8x64xf32>
    %28 = tpu.matmul %22, %27, %cst_20 {dimension_numbers = #tpu.dot_dimension_numbers<[1], [0], [0], [1], [0, 0, 1, 1], [], []>} : vector<8x128xf32>, vector<128x64xf32>, vector<8x64xf32> -> vector<8x64xf32>
    %29 = arith.addf %26, %28 : vector<8x64xf32>
    %cst_21 = arith.constant 0.000000e+00 : f32
    %30 = vector.broadcast %cst_21 : f32 to vector<8x64xf32>
    %31 = arith.maximumf %29, %30 : vector<8x64xf32>
    %c0_22 = arith.constant 0 : index
    %c0_23 = arith.constant 0 : index
    %32 = vector.load %arg9[%c0_22, %c0_23] : memref<8x64xf32, #tpu.memory_space<vmem>>, vector<8x64xf32>
    tpu.vector_store %arg9[%c0_22, %c0_23], %31 {strides = array<i32>} : memref<8x64xf32, #tpu.memory_space<vmem>>, vector<8x64xf32>,
    return
  }
  func.func @transform_0(%arg0: i32) -> (i32, i32) {
    %c0_i32 = arith.constant 0 : i32
    %c0_i32_0 = arith.constant 0 : i32
    return %arg0, %c0_i32 : i32, i32
  }
  func.func @transform_1(%arg0: i32) -> (i32, i32) {
    %c0_i32 = arith.constant 0 : i32
    %c0_i32_0 = arith.constant 0 : i32
    %c0_i32_1 = arith.constant 0 : i32
    return %c0_i32, %c0_i32_0 : i32, i32
  }
  func.func @transform_2(%arg0: i32) -> (i32, i32) {
    %c0_i32 = arith.constant 0 : i32
    %c0_i32_0 = arith.constant 0 : i32
    %c0_i32_1 = arith.constant 0 : i32
    return %c0_i32, %c0_i32_0 : i32, i32
  }
  func.func @transform_3(%arg0: i32) -> (i32, i32) {
    %c0_i32 = arith.constant 0 : i32
    %c0_i32_0 = arith.constant 0 : i32
    %c0_i32_1 = arith.constant 0 : i32
    return %c0_i32, %c0_i32_0 : i32, i32
  }
  func.func @transform_4(%arg0: i32) -> (i32, i32) {
    %c0_i32 = arith.constant 0 : i32
    %c0_i32_0 = arith.constant 0 : i32
    %c0_i32_1 = arith.constant 0 : i32
    return %c0_i32, %c0_i32_0 : i32, i32
  }
  func.func @transform_5(%arg0: i32) -> (i32, i32) {
    %c0_i32 = arith.constant 0 : i32
    %c0_i32_0 = arith.constant 0 : i32
    %c0_i32_1 = arith.constant 0 : i32
    return %c0_i32, %c0_i32_0 : i32, i32
  }
  func.func @transform_6(%arg0: i32) -> (i32, i32) {
    %c0_i32 = arith.constant 0 : i32
    %c0_i32_0 = arith.constant 0 : i32
    %c0_i32_1 = arith.constant 0 : i32
    return %c0_i32, %c0_i32_0 : i32, i32
  }
  func.func @transform_7(%arg0: i32) -> (i32, i32) {
    %c0_i32 = arith.constant 0 : i32
    %c0_i32_0 = arith.constant 0 : i32
    %c0_i32_1 = arith.constant 0 : i32
    return %c0_i32, %c0_i32_0 : i32, i32
  }
  func.func @transform_8(%arg0: i32) -> (i32, i32) {
    %c0_i32 = arith.constant 0 : i32
    %c0_i32_0 = arith.constant 0 : i32
    return %arg0, %c0_i32 : i32, i32
  }
}

</mosaic_0001>

<bundles_post_ra>
// kernel: tpu_custom_call.1
= control target key start
LH: loop header
LB: loop body
LE: loop exit
PB: predicated region body
PF: predicated region fallthrough
CT: control target
= control target key end

     0   :  { %v783_v3 = vmov 0.0|0.0   ;;  %vm784_vm0 = vmmov 0   ;;  %v785_v5 = vmov 0.0   ;;  %vm36_vm1 = vcmask 130048   ;;  %s1048_s0 = inlined_call_operand.vmem [shape: f32[8,16], index: 0, kind: input, shape index: {}]   ;;  %s1049_s1 = inlined_call_operand.vmem [shape: f32[16,128], index: 1, kind: input, shape index: {}]   ;;  %s1050_s2 = inlined_call_operand.vmem [shape: f32[16,128], index: 2, kind: input, shape index: {}]   ;;  %s1051_s3 = inlined_call_operand.vmem [shape: f32[1,128], index: 3, kind: input, shape index: {}]   ;;  %s1052_s4 = inlined_call_operand.vmem [shape: f32[128,1], index: 4, kind: input, shape index: {}]   ;;  %s1053_s5 = inlined_call_operand.vmem [shape: f32[128,1], index: 5, kind: input, shape index: {}]   ;;  %s1054_s6 = inlined_call_operand.vmem [shape: f32[1,64], index: 6, kind: input, shape index: {}]   ;;  %s1055_s7 = inlined_call_operand.vmem [shape: f32[128,64], index: 7, kind: input, shape index: {}]   ;;  %s1056_s8 = inlined_call_operand.hbm [shape: f32[8,64], index: 8, kind: output, shape index: {}]  }
   0x1   :  { %v34_v0 = vld [vmem:[%s1050_s2] sm:$0xff]  ;;  %v35_v1 = vld [vmem:[%s1050_s2 + $0x8] sm:$0xff]  ;;  %669 = vmatprep.subr.bf16.mxu1 %v783_v3  ;;  %554 = vmatprep.mubr.msk.f32.mxu1 %vm784_vm0, %v785_v5  ;;  %v210_v13 = vld [vmem:[%s1053_s5 + $0x10] sm:$0xff] }
   0x2   :  { %v30_v2 = vld [vmem:[%s1048_s0] sm:$0xff]  ;;  %v670_v4 = vpack.c.bf16 %v35_v1, %v34_v0  ;;  %v32_v7 = vld [vmem:[%s1049_s1 + $0x8] sm:$0xff]  ;;  %675 = vmatprep.subr.bf16.mxu0 %v783_v3  ;;  %596 = vmatprep.mubr.msk.f32.mxu0 %vm784_vm0, %v785_v5  ;;  %v211_v14 = vld [vmem:[%s1053_s5 + $0x18] sm:$0xff] }
   0x3   :  { %v31_v6 = vld [vmem:[%s1049_s1] sm:$0xff]  ;;  %v33_v9 = vmul.f32 %v30_v2, %v30_v2  ;;  %v209_v10 = vld [vmem:[%s1053_s5 + $0x8] sm:$0xff]  ;;  %v679_v17 = vpack.c.bf16 %v211_v14, %v210_v13  ;;  %v386_v21 = vld [vmem:[%s1055_s7 + $0x10] sm:$0xff] }
   0x4   :  { %v208_v8 = vld [vmem:[%s1053_s5] sm:$0xff]  ;;  %671 = vmatpush3.bf16.msra.mxu1 %v670_v4  ;;  %v673_v11 = vpack.c.bf16 %v32_v7, %v31_v6  ;;  %v385_v16 = vld [vmem:[%s1055_s7 + $0x8] sm:$0xff]  ;;  %v387_v22 = vld [vmem:[%s1055_s7 + $0x18] sm:$0xff] }
   0x5   :  { %v676_v12 = vpack.c.bf16 %v209_v10, %v208_v8  ;;  %672 = vmatprep.subr.bf16.mxu1 %v783_v3  ;;  %v384_v15 = vld [vmem:[%s1055_s7] sm:$0xff]  ;;  %v213_v19 = vld [vmem:[%s1053_s5 + $0x28] sm:$0xff] }
   0x6   :  { %v212_v18 = vld [vmem:[%s1053_s5 + $0x20] sm:$0xff]  ;;  %v724_v20 = vpack.c.bf16 %v385_v16, %v384_v15 }
   0x7   :  { %677 = vmatpush3.bf16.msra.mxu0 %v676_v12  ;;  %555 = vmatmul.mubr.msk.f32.vlgmr.msra.gmra.mrb[0].mxu1 %vm36_vm1, %v33_v9  ;;  %v682_v23 = vpack.c.bf16 %v213_v19, %v212_v18 }
   0x8   :  { %678 = vmatprep.subr.bf16.mxu0 %v783_v3  ;;  %674 = vmatpush3.bf16.msra.mxu1 %v673_v11 }
   0x9   :  { %561 = vmatprep.mubr.msk.f32.mxu1 %vm784_vm0, %v785_v5  ;;  %723 = vmatprep.subr.bf16.mxu1 %v783_v3 }
   0xb   :  { %680 = vmatpush3.bf16.msra.mxu0 %v679_v17 }
   0xc   :  { %13 = vsyncpa [#allocation3], 0  ;;  %562 = vmatmul.mubr.msk.f32.vlgmr.msra.gmra.mrb[2].mxu1 %vm36_vm1, %v30_v2  ;;  %681 = vmatprep.subr.bf16.mxu0 %v783_v3  ;;  %v214_v24 = vld [vmem:[%s1053_s5 + $0x30] sm:$0xff]  ;;  %v215_v25 = vld [vmem:[%s1053_s5 + $0x38] sm:$0xff]  ;;  %v727_v26 = vpack.c.bf16 %v387_v22, %v386_v21  ;;  %s787_s9 = smov [#allocation2]   ;;  %vm472_vm2 = vcmask 523264  }
   0xd   :  { %725 = vmatpush3.bf16.msra.mxu1 %v724_v20  ;;  %666 = vmatprep.mubr.msk.f32.mxu1 %vm784_vm0, %v785_v5  ;;  %v388_v27 = vld [vmem:[%s1055_s7 + $0x20] sm:$0xff]  ;;  %v389_v28 = vld [vmem:[%s1055_s7 + $0x28] sm:$0xff]  ;;  %v685_v29 = vpack.c.bf16 %v215_v25, %v214_v24  ;;  %v390_v33 = vld [vmem:[%s1055_s7 + $0x30] sm:$0xff]  ;;  %s480_s10 = sshll.u32 %s787_s9, 4  ;;  %s481_s10 = int_to_ptr.vmem [resolvable:$true] %s480_s10 }
   0xe   :  { %726 = vmatprep.subr.bf16.mxu1 %v783_v3  ;;  %v216_v30 = vld [vmem:[%s1053_s5 + $0x40] sm:$0xff]  ;;  %v217_v31 = vld [vmem:[%s1053_s5 + $0x48] sm:$0xff]  ;;  %v730_v32 = vpack.c.bf16 %v389_v28, %v388_v27  ;;  %v391_v34 = vld [vmem:[%s1055_s7 + $0x38] sm:$0xff]  ;;  %v786_v28 = vmov 0   ;;  %s759_s11 = scalar_lea.vmem %s481_s10, 128  ;;  %p764_p1 = scmp.lt.s32.totalorder %s481_s10, %s481_s10 }
   0xf   :  { %683 = vmatpush3.bf16.msra.mxu0 %v682_v23  ;;  %v688_v35 = vpack.c.bf16 %v217_v31, %v216_v30  ;;  %v218_v36 = vld [vmem:[%s1053_s5 + $0x50] sm:$0xff]  ;;  %v219_v37 = vld [vmem:[%s1053_s5 + $0x58] sm:$0xff]  ;;  %v733_v38 = vpack.c.bf16 %v391_v34, %v390_v33  ;;  %v392_v39 = vld [vmem:[%s1055_s7 + $0x40] sm:$0xff]  ;;  %754 = vset.pattern.permute.xlu0 %v786_v28  ;;  %p760_p0 = scmp.ne.s32.totalorder %s481_s10, %s759_s11  ;;  %p765_p2 = scmp.lt.s32.totalorder %s759_s11, %s759_s11 }
  0x10   :  { %684 = vmatprep.subr.bf16.mxu0 %v783_v3  ;;  %v393_v40 = vld [vmem:[%s1055_s7 + $0x48] sm:$0xff]  ;;  %v691_v41 = vpack.c.bf16 %v219_v37, %v218_v36  ;;  %v394_v43 = vld [vmem:[%s1055_s7 + $0x50] sm:$0xff]  ;;  %v395_v44 = vld [vmem:[%s1055_s7 + $0x58] sm:$0xff] }
  0x11   :  { %728 = vmatpush3.bf16.msra.mxu1 %v727_v26  ;;  %v736_v42 = vpack.c.bf16 %v393_v40, %v392_v39  ;;  %v739_v45 = vpack.c.bf16 %v395_v44, %v394_v43  ;;  %v220_v46 = vld [vmem:[%s1053_s5 + $0x60] sm:$0xff]  ;;  %v221_v47 = vld [vmem:[%s1053_s5 + $0x68] sm:$0xff]  ;;  %v222_v52 = vld [vmem:[%s1053_s5 + $0x70] sm:$0xff]  ;;  %p766_p3 = por %p765_p2, %p764_p1 }
  0x12   :  { %729 = vmatprep.subr.bf16.mxu1 %v783_v3  ;;  %v694_v48 = vpack.c.bf16 %v221_v47, %v220_v46  ;;  %v396_v49 = vld [vmem:[%s1055_s7 + $0x60] sm:$0xff]  ;;  %v397_v50 = vld [vmem:[%s1055_s7 + $0x68] sm:$0xff]  ;;  %v223_v53 = vld [vmem:[%s1053_s5 + $0x78] sm:$0xff] }
  0x13   :  { %686 = vmatpush3.bf16.msra.mxu0 %v685_v29  ;;  %v742_v51 = vpack.c.bf16 %v397_v50, %v396_v49  ;;  %v697_v54 = vpack.c.bf16 %v223_v53, %v222_v52  ;;  %v398_v55 = vld [vmem:[%s1055_s7 + $0x70] sm:$0xff]  ;;  %v399_v56 = vld [vmem:[%s1055_s7 + $0x78] sm:$0xff]  ;;  %v192_v60 = vld [vmem:[%s1052_s4] sm:$0xff]  ;;  %p767_p4 = pnand %p766_p3, %p760_p0 }
  0x14   :  { %687 = vmatprep.subr.bf16.mxu0 %v783_v3  ;;  %v745_v57 = vpack.c.bf16 %v399_v56, %v398_v55  ;;  %v193_v61 = vld [vmem:[%s1052_s4 + $0x8] sm:$0xff]  ;;  %v490_v63 = vld [vmem:[%s1051_s3] ss:$0 sm:$0xff]  ;;  %v194_v6 = vld [vmem:[%s1052_s4 + $0x10] sm:$0xff] }
  0x15   :  { %731 = vmatpush3.bf16.msra.mxu1 %v730_v32  ;;  %v700_v2 = vpack.c.bf16 %v193_v61, %v192_v60  ;;  %v195_v7 = vld [vmem:[%s1052_s4 + $0x18] sm:$0xff]  ;;  %v196_v10 = vld [vmem:[%s1052_s4 + $0x20] sm:$0xff]  ;;  %v197_v11 = vld [vmem:[%s1052_s4 + $0x28] sm:$0xff] }
  0x16   :  { %732 = vmatprep.subr.bf16.mxu1 %v783_v3  ;;  %v703_v9 = vpack.c.bf16 %v195_v7, %v194_v6  ;;  %v706_v12 = vpack.c.bf16 %v197_v11, %v196_v10  ;;  %v198_v13 = vld [vmem:[%s1052_s4 + $0x30] sm:$0xff]  ;;  %v200_v15 = vld [vmem:[%s1052_s4 + $0x40] sm:$0xff]  ;;  %v201_v16 = vld [vmem:[%s1052_s4 + $0x48] sm:$0xff] }
  0x17   :  { %689 = vmatpush3.bf16.msra.mxu0 %v688_v35  ;;  %v712_v17 = vpack.c.bf16 %v201_v16, %v200_v15  ;;  %v202_v18 = vld [vmem:[%s1052_s4 + $0x50] sm:$0xff]  ;;  %v203_v19 = vld [vmem:[%s1052_s4 + $0x58] sm:$0xff]  ;;  %v204_v21 = vld [vmem:[%s1052_s4 + $0x60] sm:$0xff] }
  0x18   :  { %690 = vmatprep.subr.bf16.mxu0 %v783_v3  ;;  %v715_v20 = vpack.c.bf16 %v203_v19, %v202_v18  ;;  %v205_v22 = vld [vmem:[%s1052_s4 + $0x68] sm:$0xff]  ;;  %v206_v24 = vld [vmem:[%s1052_s4 + $0x70] sm:$0xff]  ;;  %v207_v25 = vld [vmem:[%s1052_s4 + $0x78] sm:$0xff] }
  0x19   :  { %734 = vmatpush3.bf16.msra.mxu1 %v733_v38  ;;  %v718_v23 = vpack.c.bf16 %v205_v22, %v204_v21  ;;  %v721_v26 = vpack.c.bf16 %v207_v25, %v206_v24 }
  0x1a   :  { %735 = vmatprep.subr.bf16.mxu1 %v783_v3 }
  0x1b   :  { %692 = vmatpush3.bf16.msra.mxu0 %v691_v41 }
  0x1c   :  { %693 = vmatprep.subr.bf16.mxu0 %v783_v3 }
  0x1d   :  { %737 = vmatpush3.bf16.msra.mxu1 %v736_v42 }
  0x1e   :  { %738 = vmatprep.subr.bf16.mxu1 %v783_v3 }
  0x1f   :  { %695 = vmatpush3.bf16.msra.mxu0 %v694_v48 }
  0x20   :  { %696 = vmatprep.subr.bf16.mxu0 %v783_v3 }
  0x21   :  { %740 = vmatpush3.bf16.msra.mxu1 %v739_v45 }
  0x22   :  { %741 = vmatprep.subr.bf16.mxu1 %v783_v3 }
  0x23   :  { %698 = vmatpush3.bf16.msra.mxu0 %v697_v54 }
  0x24   :  { %699 = vmatprep.subr.bf16.mxu0 %v783_v3 }
  0x25   :  { %743 = vmatpush3.bf16.msra.mxu1 %v742_v51 }
  0x26   :  { %744 = vmatprep.subr.bf16.mxu1 %v783_v3 }
  0x29   :  { %746 = vmatpush3.bf16.msra.mxu1 %v745_v57 }
  0xda   :  { %v106_v58 = vpop.f32.mrb[0].mxu1 }
  0xdb   :  { %v556_v59 = vpop.f32.mrb[1].mxu1 }
  0xdf   :  { %v179_v62 = vpop.f32.mrb[2].mxu1 }
  0xe0   :  { %v180_v0 = vadd.f32 %v179_v62, %v106_v58  ;;  %v563_v1 = vpop.f32.mrb[3].mxu1 }
  0xe2   :  { %v190_v4 = vadd.f32 %v490_v63, %v180_v0 }
  0xe4   :  { %v370_v8 = vmax.f32 %v190_v4, 0.0  ;;  %597 = vmatmul.mubr.f32.vlgmr.msra.gmra.mrb[0].mxu0 %v190_v4  ;;  %v191_v27 = vmul.f32 %v190_v4, %v190_v4 }
  0xe5   :  { %701 = vmatpush3.bf16.msra.mxu0 %v700_v2  ;;  %631 = vmatprep.mubr.msk.f32.mxu0 %vm784_vm0, %v785_v5  ;;  %v199_v5 = vld [vmem:[%s1052_s4 + $0x38] sm:$0xff] }
  0xe6   :  { %667 = vmatmul.mubr.f32.vlgmr.msra.gmra.mrb[4].mxu1 %v370_v8  ;;  %702 = vmatprep.subr.bf16.mxu0 %v783_v3  ;;  %v709_v14 = vpack.c.bf16 %v199_v5, %v198_v13 }
  0xe9   :  { %704 = vmatpush3.bf16.msra.mxu0 %v703_v9 }
  0xea   :  { %705 = vmatprep.subr.bf16.mxu0 %v783_v3 }
  0xed   :  { %707 = vmatpush3.bf16.msra.mxu0 %v706_v12 }
  0xee   :  { %708 = vmatprep.subr.bf16.mxu0 %v783_v3 }
  0xf1   :  { %710 = vmatpush3.bf16.msra.mxu0 %v709_v14 }
  0xf2   :  { %711 = vmatprep.subr.bf16.mxu0 %v783_v3 }
  0xf5   :  { %713 = vmatpush3.bf16.msra.mxu0 %v712_v17 }
  0xf6   :  { %714 = vmatprep.subr.bf16.mxu0 %v783_v3 }
  0xf9   :  { %716 = vmatpush3.bf16.msra.mxu0 %v715_v20 }
  0xfa   :  { %717 = vmatprep.subr.bf16.mxu0 %v783_v3 }
  0xfd   :  { %719 = vmatpush3.bf16.msra.mxu0 %v718_v23 }
  0xfe   :  { %720 = vmatprep.subr.bf16.mxu0 %v783_v3  ;;  %v492_v3 = vld [vmem:[%s1054_s6] ss:$0 sm:$0xff] }
 0x101   :  { %722 = vmatpush3.bf16.msra.mxu0 %v721_v26 }
 0x104   :  { %632 = vmatmul.mubr.f32.vlgmr.msra.gmra.mrb[0].mxu0 %v191_v27 }
 0x1b9   :  { %v466_v29 = vpop.f32.mrb[4].mxu1 }
 0x1ba   :  { %v668_v30 = vpop.f32.mrb[5].mxu1 }
 0x1d7   :  { %v360_v31 = vpop.f32.mrb[0].mxu0 }
 0x1d8   :  { %v491_v32 = vmul.f32 -1.442695, %v360_v31  ;;  %v633_v33 = vpop.f32.mrb[1].mxu0 }
 0x1da   :  { %755 = vpow2.f32 %v491_v32 }
 0x1e4   :  { %v756_v34 = vpop.eup %755 }
 0x1e5   :  { %v367_v35 = vadd.f32 1.0, %v756_v34 }
 0x1e7   :  { %757 = vrcp.f32 %v367_v35 }
 0x1f1   :  { %v758_v36 = vpop.eup %757 }
 0x1f2   :  { %374 = vperm.xlu0 %754, %v758_v36  }
 0x271   :  { %v375_v37 = vpop.permute.xlu0 %374 }
 0x272   :  { %v383_v38 = vmul.f32 %v492_v3, %v375_v37 }
 0x274   :  { %v470_v39 = vadd.f32 %v466_v29, %v383_v38 }
 0x276   :  { %v471_v40 = vmax.f32 %v470_v39, 0.0 }
 0x278   :  { %473 = vst.msk [vmem:[#allocation2] sm:$0xff] %vm472_vm2, %v471_v40 }
 0x279   :  { %770 = shalt.err (!%p767_p4)
}
 0x27a   :  { %s771_s6 = scalar_lea.hbm %s1056_s8, 128 }
 0x27b   :  { %p772_p5 = scmp.ne.s32.totalorder %s1056_s8, %s771_s6  ;;  %p775_p6 = scmp.lt.u32.totalorder %s771_s6, %s1056_s8 }
 0x27d   :  { %p777_p7 = pnand %p775_p6, %p772_p5 }
 0x27f   :  { %780 = shalt.err (!%p777_p7)
}
 0x280   :  { %483 = dma.vmem_to_hbm [thread:$0]  %s481_s10, 128, %s1056_s8, [#allocation3]  }
 0x281   :  { %781 = dma.done.wait [#allocation3], 128  }
 0x282   :  { %782 = vsyncadd [#allocation3], 4294967168 }
 0x283   :  { %487 = vsyncpa [#allocation3], 1 }

</bundles_post_ra>
